<compile_context>
chip_gen: v5e
topology: v5e:2x2
jax: 0.10.0
libtpu: 0.0.40
codegen_flags: <defaults>
</compile_context>

<pallas_src>
import jax
import jax.numpy as jnp
from jax.experimental import pallas as pl
from jax.experimental.pallas import tpu as pltpu

_LANE = 128
_SQRT_HALF = 0.7071067811865476


def _round_up(x, m):
    return (x + m - 1) // m * m


def _ffn_kernel(x_ref, w1a_ref, w1g_ref, b1a_ref, b1g_ref, w2_ref, b2_ref,
                o_ref):
    # x:   (TM, dim)            -- current token tile
    # w1a: (dim, hidden)  b1a: (1, hidden)   -- "x" half of the first Linear
    # w1g: (dim, hidden)  b1g: (1, hidden)   -- "gates" half
    # w2:  (hidden, dim_p) b2: (1, dim_p)    -- second Linear (lane-padded)
    x = x_ref[...]  # keep input dtype for the MXU (bf16 stays bf16)

    # First linear, split at the weight level: never materialize (TM, 2*hidden).
    a = jnp.dot(x, w1a_ref[...], preferred_element_type=jnp.float32) + b1a_ref[...]
    g = jnp.dot(x, w1g_ref[...], preferred_element_type=jnp.float32) + b1g_ref[...]

    # Exact GELU (erf-based, matches torch.nn.functional.gelu default), f32 math.
    gelu_g = 0.5 * g * (1.0 + jax.lax.erf(g * jnp.float32(_SQRT_HALF)))
    y = (a * gelu_g).astype(w2_ref.dtype)  # GEGLU, cast back for the MXU

    # Second linear: (TM, dim_p), lane-dense store.
    out = jnp.dot(y, w2_ref[...], preferred_element_type=jnp.float32) + b2_ref[...]
    o_ref[...] = out.astype(o_ref.dtype)


def feed_forward_pallas(x, w1, b1, w2, b2, *, tm=512):
    """x: (B, N, dim). Weights already in (in, out) layout:
       w1: (dim, 2*hidden), b1: (2*hidden,), w2: (hidden, dim), b2: (dim,)."""
    B, N, dim = x.shape
    two_hidden = w1.shape[1]
    hidden = two_hidden // 2

    M = B * N
    x2d = x.reshape(M, dim)

    # --- token tiling: TM multiple of 8, capped at `tm`; pad rows if needed ---
    TM = min(tm, _round_up(M, 8))
    M_p = _round_up(M, TM)
    if M_p != M:
        x2d = jnp.pad(x2d, ((0, M_p - M), (0, 0)))

    # --- split first Linear into "x" / "gates" halves (GEGLU chunk) ---
    w1a = w1[:, :hidden]
    w1g = w1[:, hidden:]
    b1a = b1[:hidden].reshape(1, hidden)
    b1g = b1[hidden:].reshape(1, hidden)

    # --- lane-dense output: pad output feature dim to a multiple of 128 ---
    dim_p = _round_up(dim, _LANE)
    if dim_p != dim:
        w2 = jnp.pad(w2, ((0, 0), (0, dim_p - dim)))
        b2 = jnp.pad(b2, (0, dim_p - dim))
    b2_2d = b2.reshape(1, dim_p)

    grid = (pl.cdiv(M_p, TM),)

    out2d = pl.pallas_call(
        _ffn_kernel,
        out_shape=jax.ShapeDtypeStruct((M_p, dim_p), x.dtype),
        grid_spec=pltpu.PrefetchScalarGridSpec(
            num_scalar_prefetch=0,
            grid=grid,
            in_specs=[
                pl.BlockSpec((TM, dim), lambda i: (i, 0)),          # x tile
                pl.BlockSpec((dim, hidden), lambda i: (0, 0)),      # w1a (resident)
                pl.BlockSpec((dim, hidden), lambda i: (0, 0)),      # w1g (resident)
                pl.BlockSpec((1, hidden), lambda i: (0, 0)),        # b1a
                pl.BlockSpec((1, hidden), lambda i: (0, 0)),        # b1g
                pl.BlockSpec((hidden, dim_p), lambda i: (0, 0)),    # w2 (resident)
                pl.BlockSpec((1, dim_p), lambda i: (0, 0)),         # b2
            ],
            out_specs=pl.BlockSpec((TM, dim_p), lambda i: (i, 0)),
        ),
        compiler_params=pltpu.CompilerParams(
            dimension_semantics=("parallel",),       # megacore-shardable on v7x
            vmem_limit_bytes=32 * 1024 * 1024,       # explicit, safe on v5e/v6e/v7x
        ),
    )(x2d, w1a, w1g, b1a, b1g, w2, b2_2d)

    out2d = out2d[:M, :dim]
    return out2d.reshape(B, N, dim)


def feed_forward_reference(x, w1, b1, w2, b2):
    """Pure-JAX reference mirroring the PyTorch module."""
    h = jnp.einsum("bnd,dh->bnh", x, w1) + b1
    hidden = h.shape[-1] // 2
    a, g = h[..., :hidden], h[..., hidden:]
    y = a * jax.nn.gelu(g, approximate=False)
    return jnp.einsum("bnh,hd->bnd", y, w2) + b2


if __name__ == "__main__":
    # Small shapes consistent with the module: dim=32, mult=4 -> hidden=128.
    B, N, dim, mult = 2, 8, 32, 4
    hidden = dim * mult

    key = jax.random.PRNGKey(0)
    kx, k1, kb1, k2, kb2 = jax.random.split(key, 5)

    x = jax.random.normal(kx, (B, N, dim), dtype=jnp.float32)

    # Deterministic parameter init (Linear-like uniform scaling), (in, out) layout.
    lim1 = 1.0 / (dim ** 0.5)
    w1 = jax.random.uniform(k1, (dim, hidden * 2), minval=-lim1, maxval=lim1,
                            dtype=jnp.float32)
    b1 = jax.random.uniform(kb1, (hidden * 2,), minval=-lim1, maxval=lim1,
                            dtype=jnp.float32)
    lim2 = 1.0 / (hidden ** 0.5)
    w2 = jax.random.uniform(k2, (hidden, dim), minval=-lim2, maxval=lim2,
                            dtype=jnp.float32)
    b2 = jax.random.uniform(kb2, (dim,), minval=-lim2, maxval=lim2,
                            dtype=jnp.float32)

    out = feed_forward_pallas(x, w1, b1, w2, b2)
    out = jax.block_until_ready(out)

    ref = feed_forward_reference(x, w1, b1, w2, b2)
    assert out.shape == (B, N, dim)
    assert jnp.allclose(out, ref, atol=2e-5, rtol=1e-5), "mismatch vs reference"

    print("KERNEL_OK")
</pallas_src>

<mosaic_0001>
module attributes {stable_mosaic.version = 11 : i64} {
  func.func @_ffn_kernel(%arg0: i32, %arg1: memref<16x32xf32, #tpu.memory_space<vmem>>, %arg2: memref<32x128xf32, #tpu.memory_space<vmem>>, %arg3: memref<32x128xf32, #tpu.memory_space<vmem>>, %arg4: memref<1x128xf32, #tpu.memory_space<vmem>>, %arg5: memref<1x128xf32, #tpu.memory_space<vmem>>, %arg6: memref<128x128xf32, #tpu.memory_space<vmem>>, %arg7: memref<1x128xf32, #tpu.memory_space<vmem>>, %arg8: memref<16x128xf32, #tpu.memory_space<vmem>>) attributes {dimension_semantics = [#tpu.dimension_semantics<parallel>], iteration_bounds = array<i64: 1>, scalar_prefetch = 0 : i64, scratch_operands = 0 : i64, tpu.core_type = #tpu.core_type<tc>, window_params = [{transform_indices = @transform_0, window_bounds = array<i64: 16, 32>}, {pipeline_mode = #tpu.pipeline_mode<synchronous>, transform_indices = @transform_1, window_bounds = array<i64: 32, 128>}, {pipeline_mode = #tpu.pipeline_mode<synchronous>, transform_indices = @transform_2, window_bounds = array<i64: 32, 128>}, {pipeline_mode = #tpu.pipeline_mode<synchronous>, transform_indices = @transform_3, window_bounds = array<i64: 1, 128>}, {pipeline_mode = #tpu.pipeline_mode<synchronous>, transform_indices = @transform_4, window_bounds = array<i64: 1, 128>}, {pipeline_mode = #tpu.pipeline_mode<synchronous>, transform_indices = @transform_5, window_bounds = array<i64: 128, 128>}, {pipeline_mode = #tpu.pipeline_mode<synchronous>, transform_indices = @transform_6, window_bounds = array<i64: 1, 128>}, {transform_indices = @transform_7, window_bounds = array<i64: 16, 128>}]} {
    %c0 = arith.constant 0 : index
    %c0_0 = arith.constant 0 : index
    %0 = vector.load %arg1[%c0, %c0_0] : memref<16x32xf32, #tpu.memory_space<vmem>>, vector<16x32xf32>
    %c0_1 = arith.constant 0 : index
    %c0_2 = arith.constant 0 : index
    %1 = vector.load %arg2[%c0_1, %c0_2] : memref<32x128xf32, #tpu.memory_space<vmem>>, vector<32x128xf32>
    %cst = arith.constant dense<0.000000e+00> : vector<16x128xf32>
    %2 = tpu.matmul %0, %1, %cst {dimension_numbers = #tpu.dot_dimension_numbers<[1], [0], [0], [1], [0, 0, 1, 1], [], []>} : vector<16x32xf32>, vector<32x128xf32>, vector<16x128xf32> -> vector<16x128xf32>
    %c0_3 = arith.constant 0 : index
    %c0_4 = arith.constant 0 : index
    %3 = vector.load %arg4[%c0_3, %c0_4] : memref<1x128xf32, #tpu.memory_space<vmem>>, vector<1x128xf32>
    %4 = vector.broadcast %3 : vector<1x128xf32> to vector<16x128xf32>
    %5 = arith.addf %2, %4 : vector<16x128xf32>
    %c0_5 = arith.constant 0 : index
    %c0_6 = arith.constant 0 : index
    %6 = vector.load %arg3[%c0_5, %c0_6] : memref<32x128xf32, #tpu.memory_space<vmem>>, vector<32x128xf32>
    %cst_7 = arith.constant dense<0.000000e+00> : vector<16x128xf32>
    %7 = tpu.matmul %0, %6, %cst_7 {dimension_numbers = #tpu.dot_dimension_numbers<[1], [0], [0], [1], [0, 0, 1, 1], [], []>} : vector<16x32xf32>, vector<32x128xf32>, vector<16x128xf32> -> vector<16x128xf32>
    %c0_8 = arith.constant 0 : index
    %c0_9 = arith.constant 0 : index
    %8 = vector.load %arg5[%c0_8, %c0_9] : memref<1x128xf32, #tpu.memory_space<vmem>>, vector<1x128xf32>
    %9 = vector.broadcast %8 : vector<1x128xf32> to vector<16x128xf32>
    %10 = arith.addf %7, %9 : vector<16x128xf32>
    %cst_10 = arith.constant 5.000000e-01 : f32
    %11 = vector.broadcast %cst_10 : f32 to vector<16x128xf32>
    %12 = arith.mulf %11, %10 : vector<16x128xf32>
    %cst_11 = arith.constant 0.707106769 : f32
    %13 = vector.broadcast %cst_11 : f32 to vector<16x128xf32>
    %14 = arith.mulf %10, %13 : vector<16x128xf32>
    %15 = math.erf %14 : vector<16x128xf32>
    %cst_12 = arith.constant 1.000000e+00 : f32
    %16 = vector.broadcast %cst_12 : f32 to vector<16x128xf32>
    %17 = arith.addf %16, %15 : vector<16x128xf32>
    %18 = arith.mulf %12, %17 : vector<16x128xf32>
    %19 = arith.mulf %5, %18 : vector<16x128xf32>
    %c0_13 = arith.constant 0 : index
    %c0_14 = arith.constant 0 : index
    %20 = vector.load %arg6[%c0_13, %c0_14] : memref<128x128xf32, #tpu.memory_space<vmem>>, vector<128x128xf32>
    %cst_15 = arith.constant dense<0.000000e+00> : vector<16x128xf32>
    %21 = tpu.matmul %19, %20, %cst_15 {dimension_numbers = #tpu.dot_dimension_numbers<[1], [0], [0], [1], [0, 0, 1, 1], [], []>} : vector<16x128xf32>, vector<128x128xf32>, vector<16x128xf32> -> vector<16x128xf32>
    %c0_16 = arith.constant 0 : index
    %c0_17 = arith.constant 0 : index
    %22 = vector.load %arg7[%c0_16, %c0_17] : memref<1x128xf32, #tpu.memory_space<vmem>>, vector<1x128xf32>
    %23 = vector.broadcast %22 : vector<1x128xf32> to vector<16x128xf32>
    %24 = arith.addf %21, %23 : vector<16x128xf32>
    %c0_18 = arith.constant 0 : index
    %c0_19 = arith.constant 0 : index
    %25 = vector.load %arg8[%c0_18, %c0_19] : memref<16x128xf32, #tpu.memory_space<vmem>>, vector<16x128xf32>
    tpu.vector_store %arg8[%c0_18, %c0_19], %24 {strides = array<i32>} : memref<16x128xf32, #tpu.memory_space<vmem>>, vector<16x128xf32>,
    return
  }
  func.func @transform_0(%arg0: i32) -> (i32, i32) {
    %c0_i32 = arith.constant 0 : i32
    %c0_i32_0 = arith.constant 0 : i32
    return %arg0, %c0_i32 : i32, i32
  }
  func.func @transform_1(%arg0: i32) -> (i32, i32) {
    %c0_i32 = arith.constant 0 : i32
    %c0_i32_0 = arith.constant 0 : i32
    %c0_i32_1 = arith.constant 0 : i32
    return %c0_i32, %c0_i32_0 : i32, i32
  }
  func.func @transform_2(%arg0: i32) -> (i32, i32) {
    %c0_i32 = arith.constant 0 : i32
    %c0_i32_0 = arith.constant 0 : i32
    %c0_i32_1 = arith.constant 0 : i32
    return %c0_i32, %c0_i32_0 : i32, i32
  }
  func.func @transform_3(%arg0: i32) -> (i32, i32) {
    %c0_i32 = arith.constant 0 : i32
    %c0_i32_0 = arith.constant 0 : i32
    %c0_i32_1 = arith.constant 0 : i32
    return %c0_i32, %c0_i32_0 : i32, i32
  }
  func.func @transform_4(%arg0: i32) -> (i32, i32) {
    %c0_i32 = arith.constant 0 : i32
    %c0_i32_0 = arith.constant 0 : i32
    %c0_i32_1 = arith.constant 0 : i32
    return %c0_i32, %c0_i32_0 : i32, i32
  }
  func.func @transform_5(%arg0: i32) -> (i32, i32) {
    %c0_i32 = arith.constant 0 : i32
    %c0_i32_0 = arith.constant 0 : i32
    %c0_i32_1 = arith.constant 0 : i32
    return %c0_i32, %c0_i32_0 : i32, i32
  }
  func.func @transform_6(%arg0: i32) -> (i32, i32) {
    %c0_i32 = arith.constant 0 : i32
    %c0_i32_0 = arith.constant 0 : i32
    %c0_i32_1 = arith.constant 0 : i32
    return %c0_i32, %c0_i32_0 : i32, i32
  }
  func.func @transform_7(%arg0: i32) -> (i32, i32) {
    %c0_i32 = arith.constant 0 : i32
    %c0_i32_0 = arith.constant 0 : i32
    return %arg0, %c0_i32 : i32, i32
  }
}

</mosaic_0001>

<bundles_post_ra>
// kernel: tpu_custom_call.1
= control target key start
LH: loop header
LB: loop body
LE: loop exit
PB: predicated region body
PF: predicated region fallthrough
CT: control target
= control target key end

     0   :  { %12 = vsyncpa [#allocation3], 0  ;;  %s597_s0 = inlined_call_operand.hbm [shape: f32[16,32], index: 0, kind: input, shape index: {}]   ;;  %s598_s1 = inlined_call_operand.hbm [shape: f32[32,128], index: 1, kind: input, shape index: {}]   ;;  %s599_s2 = inlined_call_operand.hbm [shape: f32[32,128], index: 2, kind: input, shape index: {}]   ;;  %s600_s3 = inlined_call_operand.vmem [shape: f32[1,128], index: 3, kind: input, shape index: {}]   ;;  %s601_s4 = inlined_call_operand.vmem [shape: f32[1,128], index: 4, kind: input, shape index: {}]   ;;  %s602_s5 = inlined_call_operand.hbm [shape: f32[128,128], index: 5, kind: input, shape index: {}]   ;;  %s603_s6 = inlined_call_operand.vmem [shape: f32[1,128], index: 6, kind: input, shape index: {}]   ;;  %s604_s7 = inlined_call_operand.hbm [shape: f32[16,128], index: 7, kind: output, shape index: {}]  }
   0x1   :  { %13 = vsyncpa [#allocation6], 0 }
   0x2   :  { %14 = vsyncpa [#allocation9], 0 }
   0x3   :  { %15 = vsyncpa [#allocation4], 0  ;;  %s33_s26 = sshll.u32 %s598_s1, 4  ;;  %s481_s27 = smov [#allocation5]   ;;  %s34_s26 = int_to_ptr.hbm [resolvable:$true] %s33_s26 }
   0x4   :  { %s35_s28 = sshll.u32 %s481_s27, 4  ;;  %s20_s8 = sshll.u32 %s597_s0, 4  ;;  %s36_s28 = int_to_ptr.vmem [resolvable:$true] %s35_s28  ;;  %s21_s8 = int_to_ptr.hbm [resolvable:$true] %s20_s8 }
   0x5   :  { %s482_s9 = smov 128   ;;  %s483_s10 = smov 8  }
   0x6   :  { %41 = dma.hbm_to_vmem [thread:$0]  %s34_s26, 512, %s36_s28, [#allocation6], %s482_s9, %s482_s9, %s483_s10  }
   0x7   :  { %s484_s11 = smov [#allocation2]   ;;  %s46_s1 = sshll.u32 %s599_s2, 4  ;;  %s47_s1 = int_to_ptr.hbm [resolvable:$true] %s46_s1 }
   0x8   :  { %s22_s12 = sshll.u32 %s484_s11, 4  ;;  %s63_s16 = sshll.u32 %s602_s5, 4  ;;  %s23_s12 = int_to_ptr.vmem [resolvable:$true] %s22_s12  ;;  %s64_s16 = int_to_ptr.hbm [resolvable:$true] %s63_s16 }
   0x9   :  { %28 = dma.hbm_to_vmem [thread:$0]  %s21_s8, 256, %s23_s12, [#allocation3], %s482_s9, %s482_s9, %s483_s10  }
   0xa   :  { %s485_s17 = smov [#allocation7]   ;;  %s486_s19 = smov [#allocation8]  }
   0xb   :  { %s48_s18 = sshll.u32 %s485_s17, 4  ;;  %s65_s2 = sshll.u32 %s486_s19, 4  ;;  %s49_s18 = int_to_ptr.vmem [resolvable:$true] %s48_s18  ;;  %s66_s2 = int_to_ptr.vmem [resolvable:$true] %s65_s2 }
   0xc   :  { %54 = dma.hbm_to_vmem [thread:$0]  %s47_s1, 512, %s49_s18, [#allocation6], %s482_s9, %s482_s9, %s483_s10  }
   0xd   :  { %71 = dma.hbm_to_vmem [thread:$0]  %s64_s16, 2048, %s66_s2, [#allocation9], %s482_s9, %s482_s9, %s483_s10  }
   0xe   :  { %473 = dma.done.wait [#allocation3], 256  }
   0xf   :  { %474 = vsyncadd [#allocation3], 4294967040 }
  0x10   :  { %475 = dma.done.wait [#allocation6], 1024  }
  0x11   :  { %476 = vsyncadd [#allocation6], 4294966272 }
  0x12   :  { %477 = dma.done.wait [#allocation9], 2048  }
  0x13   :  { %478 = vsyncadd [#allocation9], 4294965248  ;;  %v133_v0 = vld [vmem:[#allocation7 + $0x18] sm:$0xff]  ;;  %v132_v1 = vld [vmem:[#allocation7 + $0x10] sm:$0xff]  ;;  %vm100_vm0 = vcmask 261120   ;;  %s487_s23 = smov [#allocation10]  }
  0x14   :  { %150 = vmatpush.msra.mxu1 %v133_v0  ;;  %v131_v2 = vld [vmem:[#allocation7 + $0x8] sm:$0xff]  ;;  %v95_v3 = vld [vmem:[#allocation5 + $0x18] sm:$0xff]  ;;  %v94_v4 = vld [vmem:[#allocation5 + $0x10] sm:$0xff]  ;;  %s300_s24 = sshll.u32 %s487_s23, 4  ;;  %s302_s27 = sshll.u32 %s604_s7, 4  ;;  %s301_s24 = int_to_ptr.vmem [resolvable:$true] %s300_s24  ;;  %s303_s27 = int_to_ptr.hbm [resolvable:$true] %s302_s27 }
  0x15   :  { %v130_v5 = vld [vmem:[#allocation7] sm:$0xff]  ;;  %119 = vmatpush.msra.mxu0 %v95_v3  ;;  %v93_v6 = vld [vmem:[#allocation5 + $0x8] sm:$0xff]  ;;  %v90_v7 = vld [vmem:[#allocation2] sm:$0xff] }
  0x16   :  { %151 = vmatpush.msra.mxu1 %v132_v1  ;;  %v92_v8 = vld [vmem:[#allocation5] sm:$0xff]  ;;  %v91_v9 = vld [vmem:[#allocation2 + $0x8] sm:$0xff]  ;;  %v265_v11 = vld [vmem:[#allocation8 + $0x70] sm:$0xff] }
  0x17   :  { %120 = vmatpush.msra.mxu0 %v94_v4  ;;  %v266_v10 = vld [vmem:[#allocation8 + $0x78] sm:$0xff]  ;;  %v264_v12 = vld [vmem:[#allocation8 + $0x68] sm:$0xff]  ;;  %v346_v13 = vld [vmem:[%s601_s4] ss:$0 sm:$0xff] }
  0x18   :  { %152 = vmatpush.msra.mxu1 %v131_v2  ;;  %271 = vmatpush.msra.mxu2 %v266_v10  ;;  %v263_v14 = vld [vmem:[#allocation8 + $0x60] sm:$0xff]  ;;  %v262_v16 = vld [vmem:[#allocation8 + $0x58] sm:$0xff]  ;;  %v261_v18 = vld [vmem:[#allocation8 + $0x50] sm:$0xff] }
  0x19   :  { %121 = vmatpush.msra.mxu0 %v93_v6  ;;  %323 = vmatpush.msra.mxu3 %v266_v10  ;;  %v260_v20 = vld [vmem:[#allocation8 + $0x48] sm:$0xff]  ;;  %v259_v22 = vld [vmem:[#allocation8 + $0x40] sm:$0xff]  ;;  %v258_v23 = vld [vmem:[#allocation8 + $0x38] sm:$0xff] }
  0x1a   :  { %153 = vmatpush.msra.mxu1 %v130_v5  ;;  %272 = vmatpush.msra.mxu2 %v265_v11  ;;  %v257_v26 = vld [vmem:[#allocation8 + $0x30] sm:$0xff]  ;;  %v256_v30 = vld [vmem:[#allocation8 + $0x28] sm:$0xff]  ;;  %v255_v33 = vld [vmem:[#allocation8 + $0x20] sm:$0xff] }
  0x1b   :  { %319 = vmatmul.msk.f32.vlgmr.msra.gmra.mxu1 %vm100_vm0, %v90_v7  ;;  %122 = vmatpush.msra.mxu0 %v92_v8  ;;  %v254_v37 = vld [vmem:[#allocation8 + $0x18] sm:$0xff]  ;;  %v253_v40 = vld [vmem:[#allocation8 + $0x10] sm:$0xff]  ;;  %v252_v45 = vld [vmem:[#allocation8 + $0x8] sm:$0xff] }
  0x1c   :  { %317 = vmatmul.msk.f32.vlgmr.msra.gmra.mxu0 %vm100_vm0, %v90_v7  ;;  %324 = vmatpush.msra.mxu3 %v265_v11  ;;  %v251_v49 = vld [vmem:[#allocation8] sm:$0xff] }
  0x1d   :  { %273 = vmatpush.msra.mxu2 %v264_v12 }
  0x1e   :  { %325 = vmatpush.msra.mxu3 %v264_v12 }
  0x1f   :  { %274 = vmatpush.msra.mxu2 %v263_v14 }
  0x20   :  { %326 = vmatpush.msra.mxu3 %v263_v14 }
  0x21   :  { %275 = vmatpush.msra.mxu2 %v262_v16 }
  0x22   :  { %327 = vmatpush.msra.mxu3 %v262_v16 }
  0x23   :  { %320 = vmatmul.msk.f32.gmra.mxu1 %vm100_vm0, %v91_v9  ;;  %276 = vmatpush.msra.mxu2 %v261_v18 }
  0x24   :  { %318 = vmatmul.msk.f32.gmra.mxu0 %vm100_vm0, %v91_v9  ;;  %328 = vmatpush.msra.mxu3 %v261_v18 }
  0x25   :  { %277 = vmatpush.msra.mxu2 %v260_v20 }
  0x26   :  { %329 = vmatpush.msra.mxu3 %v260_v20 }
  0x27   :  { %278 = vmatpush.msra.mxu2 %v259_v22 }
  0x28   :  { %330 = vmatpush.msra.mxu3 %v259_v22 }
  0x29   :  { %279 = vmatpush.msra.mxu2 %v258_v23 }
  0x2a   :  { %331 = vmatpush.msra.mxu3 %v258_v23 }
  0x2b   :  { %280 = vmatpush.msra.mxu2 %v257_v26 }
  0x2c   :  { %332 = vmatpush.msra.mxu3 %v257_v26 }
  0x2d   :  { %281 = vmatpush.msra.mxu2 %v256_v30 }
  0x2e   :  { %333 = vmatpush.msra.mxu3 %v256_v30  ;;  %v347_v30 = vld [vmem:[%s600_s3] ss:$0 sm:$0xff] }
  0x2f   :  { %282 = vmatpush.msra.mxu2 %v255_v33 }
  0x30   :  { %334 = vmatpush.msra.mxu3 %v255_v33 }
  0x31   :  { %283 = vmatpush.msra.mxu2 %v254_v37 }
  0x32   :  { %335 = vmatpush.msra.mxu3 %v254_v37 }
  0x33   :  { %284 = vmatpush.msra.mxu2 %v253_v40 }
  0x34   :  { %336 = vmatpush.msra.mxu3 %v253_v40 }
  0x35   :  { %285 = vmatpush.msra.mxu2 %v252_v45 }
  0x36   :  { %337 = vmatpush.msra.mxu3 %v252_v45 }
  0x37   :  { %286 = vmatpush.msra.mxu2 %v251_v49 }
  0x38   :  { %338 = vmatpush.msra.mxu3 %v251_v49 }
  0x98   :  { %v155_v15 = vpop.f32.mrf.mxu1 }
  0x99   :  { %v555_v17 = vadd.f32 %v346_v13, %v155_v15  ;;  %v124_v26 = vpop.f32.mrf.mxu0 }
  0x9b   :  { %v558_v19 = vmul.f32 0.70710677, %v555_v17 }
  0x9d   :  { %v165_v21 = vmul.f32 %v558_v19, %v558_v19 }
  0x9f   :  { %v562_v24 = vmin.f32 %v165_v21, 16.0 }
  0xa0   :  { %v158_v25 = vpop.f32.mrf.mxu1 }
  0xa1   :  { %v167_v27 = vmul.f32 2.1237322e-06, %v562_v24  ;;  %v565_v28 = vadd.f32 %v346_v13, %v158_v25  ;;  %v178_v29 = vmul.f32 3.8918573e-05, %v562_v24 }
  0xa3   :  { %v168_v31 = vadd.f32 0.00028619796, %v167_v27  ;;  %v569_v32 = vmul.f32 0.70710677, %v565_v28  ;;  %v179_v34 = vadd.f32 0.001143296, %v178_v29 }
  0xa5   :  { %v169_v35 = vmul.f32 %v168_v31, %v562_v24  ;;  %v205_v36 = vmul.f32 %v569_v32, %v569_v32  ;;  %v180_v38 = vmul.f32 %v179_v34, %v562_v24 }
  0xa7   :  { %v206_v39 = vmin.f32 %v205_v36, 16.0  ;;  %v181_v41 = vadd.f32 0.014752088, %v180_v38  ;;  %v170_v42 = vadd.f32 0.0036580483, %v169_v35 }
  0xa9   :  { %v207_v43 = vmul.f32 2.1237322e-06, %v206_v39  ;;  %v218_v44 = vmul.f32 3.8918573e-05, %v206_v39  ;;  %v182_v46 = vmul.f32 %v181_v41, %v562_v24  ;;  %v171_v51 = vmul.f32 %v170_v42, %v562_v24 }
  0xab   :  { %v208_v47 = vadd.f32 0.00028619796, %v207_v43  ;;  %v219_v48 = vadd.f32 0.001143296, %v218_v44  ;;  %v183_v50 = vadd.f32 0.112945676, %v182_v46 }
  0xac   :  { %v172_v58 = vadd.f32 0.05243302, %v171_v51 }
  0xad   :  { %v209_v52 = vmul.f32 %v208_v47, %v206_v39  ;;  %v220_v53 = vmul.f32 %v219_v48, %v206_v39  ;;  %v184_v54 = vmul.f32 %v183_v50, %v562_v24  ;;  %v127_v48 = vpop.f32.mrf.mxu0  ;;  %v162_v50 = vmul.f32 0.5, %v565_v28 }
  0xae   :  { %v173_v0 = vmul.f32 %v172_v58, %v562_v24  ;;  %v128_v51 = vadd.f32 %v347_v30, %v127_v48 }
  0xaf   :  { %v221_v55 = vadd.f32 0.014752088, %v220_v53  ;;  %v210_v56 = vadd.f32 0.0036580483, %v209_v52  ;;  %v185_v57 = vadd.f32 0.4994258, %v184_v54 }
  0xb0   :  { %v174_v4 = vadd.f32 0.18741608, %v173_v0 }
  0xb1   :  { %v222_v59 = vmul.f32 %v221_v55, %v206_v39  ;;  %v186_v60 = vmul.f32 %v185_v57, %v562_v24  ;;  %v211_v62 = vmul.f32 %v210_v56, %v206_v39 }
  0xb2   :  { %v175_v9 = vmul.f32 %v174_v4, %v562_v24 }
  0xb3   :  { %v223_v61 = vadd.f32 0.112945676, %v222_v59  ;;  %v187_v63 = vadd.f32 1.0, %v186_v60  ;;  %v212_v3 = vadd.f32 0.05243302, %v211_v62 }
  0xb4   :  { %v176_v14 = vadd.f32 1.1283791, %v175_v9 }
  0xb5   :  { %v224_v1 = vmul.f32 %v223_v61, %v206_v39  ;;  %349 = vrcp.f32 %v187_v63  ;;  %v213_v8 = vmul.f32 %v212_v3, %v206_v39  ;;  %v199_v13 = vand.u32 2147483648, %v187_v63 }
  0xb6   :  { %v197_v16 = vand.u32 2147483647, %v187_v63  ;;  %vm193_vm2 = vweird.f32 %v187_v63  ;;  %v177_v25 = vmul.f32 %v176_v14, %v558_v19  ;;  %v161_v19 = vmul.f32 0.5, %v555_v17 }
  0xb7   :  { %v225_v2 = vadd.f32 0.4994258, %v224_v1  ;;  %v214_v12 = vadd.f32 0.18741608, %v213_v8  ;;  %v200_v22 = vor.u32 1.1754944e-38, %v199_v13 }
  0xb8   :  { %vm198_vm4 = vcmp.eq.f32.partialorder %v197_v16, 8.507059e+37 }
  0xb9   :  { %v226_v5 = vmul.f32 %v225_v2, %v206_v39  ;;  %v215_v21 = vmul.f32 %v214_v12, %v206_v39  ;;  %v125_v39 = vadd.f32 %v347_v30, %v124_v26 }
  0xbb   :  { %v227_v6 = vadd.f32 1.0, %v226_v5  ;;  %v350_v7 = vpop.eup %349  ;;  %v216_v34 = vadd.f32 1.1283791, %v215_v21 }
  0xbc   :  { %v189_v10 = vmul.f32 %v350_v7, %v187_v63  ;;  %vm194_vm1 = vweird.f32 %v350_v7 }
  0xbd   :  { %351 = vrcp.f32 %v227_v6  ;;  %vm195_vm3 = vmor %vm193_vm2, %vm194_vm1  ;;  %v239_v33 = vand.u32 2147483648, %v227_v6  ;;  %v237_v36 = vand.u32 2147483647, %v227_v6  ;;  %vm233_vm6 = vweird.f32 %v227_v6 }
  0xbe   :  { %v190_v11 = vsub.f32 1.0, %v189_v10  ;;  %v217_v42 = vmul.f32 %v216_v34, %v569_v32  ;;  %v348_v32 = vld [vmem:[%s603_s6] ss:$0 sm:$0xff] }
  0xbf   :  { %v240_v41 = vor.u32 1.1754944e-38, %v239_v33  ;;  %vm238_vm8 = vcmp.eq.f32.partialorder %v237_v36, 8.507059e+37 }
  0xc0   :  { %v191_v15 = vmul.f32 %v350_v7, %v190_v11 }
  0xc2   :  { %v192_v20 = vadd.f32 %v350_v7, %v191_v15 }
  0xc3   :  { %v352_v18 = vpop.eup %351 }
  0xc4   :  { %v229_v23 = vmul.f32 %v352_v18, %v227_v6  ;;  %v196_v24 = vsel %vm195_vm3, %v350_v7, %v192_v20  ;;  %vm234_vm5 = vweird.f32 %v352_v18 }
  0xc5   :  { %v201_v27 = vsel %vm198_vm4, %v200_v22, %v196_v24  ;;  %vm235_vm7 = vmor %vm233_vm6, %vm234_vm5 }
  0xc6   :  { %v230_v29 = vsub.f32 1.0, %v229_v23  ;;  %v202_v31 = vmul.f32 %v201_v27, %v177_v25 }
  0xc8   :  { %v231_v35 = vmul.f32 %v352_v18, %v230_v29  ;;  %v321_v37 = vclamps-f32 %v202_v31, 1.0 }
  0xca   :  { %v232_v38 = vadd.f32 %v352_v18, %v231_v35  ;;  %v245_v40 = vadd.f32 1.0, %v321_v37 }
  0xcc   :  { %v236_v43 = vsel %vm235_vm7, %v352_v18, %v232_v38  ;;  %v247_v44 = vmul.f32 %v245_v40, %v161_v19 }
  0xcd   :  { %v241_v45 = vsel %vm238_vm8, %v240_v41, %v236_v43 }
  0xce   :  { %v242_v46 = vmul.f32 %v241_v45, %v217_v42  ;;  %v249_v47 = vmul.f32 %v247_v44, %v125_v39 }
  0xd0   :  { %v322_v49 = vclamps-f32 %v242_v46, 1.0  ;;  %287 = vmatmul.f32.vlgmr.msra.gmra.mxu2 %v249_v47 }
  0xd2   :  { %v246_v52 = vadd.f32 1.0, %v322_v49 }
  0xd4   :  { %v248_v17 = vmul.f32 %v246_v52, %v162_v50 }
  0xd6   :  { %v250_v53 = vmul.f32 %v248_v17, %v128_v51 }
  0xd8   :  { %290 = vmatmul.f32.vlgmr.msra.gmra.mxu3 %v250_v53 }
 0x153   :  { %v288_v54 = vpop.f32.mrf.mxu2 }
 0x154   :  { %v289_v55 = vadd.f32 %v348_v32, %v288_v54 }
 0x156   :  { %294 = vst [vmem:[#allocation10] sm:$0xff] %v289_v55 }
 0x15b   :  { %v291_v56 = vpop.f32.mrf.mxu3 }
 0x15c   :  { %v292_v28 = vadd.f32 %v348_v32, %v291_v56 }
 0x15e   :  { %295 = vst [vmem:[#allocation10 + $0x8] sm:$0xff] %v292_v28 }
 0x15f   :  { %308 = dma.vmem_to_hbm [thread:$0]  %s301_s24, 256, %s303_s27, [#allocation4], %s482_s9, %s482_s9, %s483_s10  }
 0x160   :  { %479 = dma.done.wait [#allocation4], 256  }
 0x161   :  { %480 = vsyncadd [#allocation4], 4294967040 }
 0x162   :  { %313 = vsyncpa [#allocation3], 1 }
 0x163   :  { %314 = vsyncpa [#allocation6], 1 }
 0x164   :  { %315 = vsyncpa [#allocation9], 1 }
 0x165   :  { %316 = vsyncpa [#allocation4], 1 }

</bundles_post_ra>
